<compile_context>
chip_gen: v7x
topology: tpu7x:2x2x1
jax: 0.10.0
libtpu: 0.0.40
codegen_flags: <defaults>
</compile_context>

<pallas_src>
import functools
import math

import jax
import jax.numpy as jnp
from jax import lax
from jax.experimental import pallas as pl
from jax.experimental.pallas import tpu as pltpu


def _round_up(x, m):
    return (x + m - 1) // m * m


def sinusoidal_position_encoding(length, d_model, offset=0, dtype=jnp.float32):
    """wenet PositionalEncoding table: pe[:, 0::2]=sin, pe[:, 1::2]=cos."""
    pos = jnp.arange(offset, offset + length, dtype=jnp.float32)[:, None]
    div = jnp.exp(
        jnp.arange(0, d_model, 2, dtype=jnp.float32) * -(math.log(10000.0) / d_model))
    pe = jnp.zeros((length, d_model), dtype=jnp.float32)
    pe = pe.at[:, 0::2].set(jnp.sin(pos * div))
    pe = pe.at[:, 1::2].set(jnp.cos(pos * div))
    return pe.astype(dtype)


# ---------------------------------------------------------------------------
# Fast path: table resident in VMEM, gather = one-hot matmul on the MXU.
# ---------------------------------------------------------------------------
def _embed_resident_kernel(ids_ref, table_ref, pe_ref, out_ref, *, xscale):
    """One grid step = one (batch row, token tile).

    ids_ref:   (1, tt, 1) int32  VMEM (token ids, column orientation)
    table_ref: (Vp, D)           VMEM (whole table; constant index -> resident)
    pe_ref:    (tt, D)   f32     VMEM (positional-encoding tile)
    out_ref:   (1, tt, D)        VMEM (output tile)
    """
    ids_col = ids_ref[0]                                        # (tt, 1) int32
    tt = ids_col.shape[0]
    v_pad = table_ref.shape[0]
    # one_hot[t, v] = (ids[t] == v); padded rows (v >= V) never match because
    # ids are clamped to V - 1 in the wrapper.
    onehot = (ids_col == lax.broadcasted_iota(jnp.int32, (tt, v_pad), 1))
    emb = jnp.dot(onehot.astype(table_ref.dtype), table_ref[...],
                  preferred_element_type=jnp.float32)           # (tt, D) f32
    # TODO(synk): for D < 128 the store is lane-masked; a lane-dense flat
    # layout would need an in-kernel relayout of the matmul result.
    out_ref[0, :, :] = (emb * xscale + pe_ref[...].astype(jnp.float32)
                        ).astype(out_ref.dtype)


# ---------------------------------------------------------------------------
# Slow path: large vocab, per-token row DMAs from HBM with a 2-slot pipeline.
# ---------------------------------------------------------------------------
def _embed_gather_kernel(ids_ref, table_hbm, pe_ref, out_ref, gbuf, sem,
                         *, xscale, tt, n_t, t_pad):
    """One grid step = one token tile of the flattened (B * n_t) grid.

    ids_ref:   (B * t_pad,) int32 SMEM (scalar prefetch, flattened 1-D)
    table_hbm: (V, D)             HBM  (never copied wholesale to VMEM)
    pe_ref:    (tt, D)   f32      VMEM (positional-encoding tile)
    out_ref:   (1, tt, D)         VMEM (output tile)
    gbuf:      (2, tt, D)         VMEM scratch (double-buffered gather dest)
    sem:       (2,)               DMA semaphores (one per slot)
    """
    i = pl.program_id(0)
    n_steps = pl.num_programs(0)
    slot = i & 1

    def issue(step, slot_idx):
        # `step` indexes the flattened (B * n_t) grid; its tokens occupy the
        # contiguous ids range [b * t_pad + j * tt, ... + tt).
        b = step // n_t
        j = step - b * n_t
        base = pl.multiple_of(b * t_pad + j * tt, 8)

        # TODO(synk): for the last tile of a row only `T - j*tt` tokens are
        # real; padded tokens gather (clamped) row 0 and are sliced off later.
        def body(k, carry):
            tok = ids_ref[base + k]
            pltpu.make_async_copy(
                table_hbm.at[pl.ds(tok, 1)],            # (1, D) HBM row
                gbuf.at[slot_idx, pl.ds(k, 1)],         # (1, D) VMEM row
                sem.at[slot_idx],
            ).start()
            return carry

        lax.fori_loop(0, tt, body, 0, unroll=8)

    # Cold prime exactly once for the whole call: the grid is flattened over
    # (batch x tile), so every later tile -- including the first tile of the
    # next batch row -- is prefetched one step ahead into the other slot.
    @pl.when(i == 0)
    def _():
        issue(0, 0)

    @pl.when(i + 1 < n_steps)
    def _():
        issue(i + 1, 1 - slot)

    # ONE coalesced wait: DMA semaphores count bytes, so a descriptor covering
    # the whole (tt, D) slot drains all `tt` row copies issued into this slot.
    # Only the size of the descriptor matters for .wait().
    pltpu.make_async_copy(gbuf.at[slot], gbuf.at[slot], sem.at[slot]).wait()

    emb = gbuf[slot].astype(jnp.float32)                # f32 accumulate
    # TODO(synk): for D < 128 a lane-dense (1, tt*D) flat layout would make
    # this store unmasked; large-vocab tables normally have D >= 128.
    out_ref[0, :, :] = (emb * xscale + pe_ref[...].astype(jnp.float32)
                        ).astype(out_ref.dtype)


# Resident-table cutoff: sized for v7x (64 MiB physical / 32 MiB scoped VMEM);
# conservative (and therefore also valid) for v5e / v6e's 128 MiB VMEM.
_FAST_PATH_VMEM_BUDGET = 28 * 1024 * 1024


def embedding_no_subsampling(ids, x_mask, embed_table, offset=0, *,
                             token_tile=256, force_path=None):
    """Pallas-backed forward of EmbedinigNoSubsampling.

    Args:
      ids:         (B, T) int token ids.
      x_mask:      (B, 1, T) bool mask (passed through unchanged).
      embed_table: (V, D) embedding weight.
      offset:      int positional-encoding offset.
      token_tile:  tokens per grid step (256-512 recommended for long T).
      force_path:  None | "resident" | "gather"  (testing hook).

    Returns:
      (x, pos_emb, x_mask) with x: (B, T, D), pos_emb: (1, T, D) float32.
    """
    B, T = ids.shape
    V, D = embed_table.shape
    xscale = math.sqrt(D)
    out_dtype = embed_table.dtype
    itemsize = jnp.dtype(out_dtype).itemsize

    pe = sinusoidal_position_encoding(T, D, offset)              # (T, D) f32

    # Clamp like jnp.take's default "clip" mode; also guarantees every gather
    # (DMA row or one-hot match) addresses a valid table row.
    ids_i32 = jnp.clip(ids.astype(jnp.int32), 0, V - 1)

    # Token-tile the time axis (sublane-aligned); pad T so tiles are uniform.
    tt = min(token_tile, _round_up(T, 8))
    t_pad = _round_up(T, tt)
    n_t = t_pad // tt
    if t_pad != T:
        ids_i32 = jnp.pad(ids_i32, ((0, 0), (0, t_pad - T)))
        pe_in = jnp.pad(pe, ((0, t_pad - T), (0, 0)))
    else:
        pe_in = pe

    # --- path selection: VMEM-resident table vs HBM DMA gather --------------
    v_pad = _round_up(V, 128)              # lane/MXU-friendly contraction dim
    tile_bytes = tt * D * (4 + itemsize) + tt * 4   # pe(f32) + out + ids / buffer
    resident_need = 2 * v_pad * D * itemsize + 2 * tile_bytes + (2 << 20)
    use_resident = resident_need <= _FAST_PATH_VMEM_BUDGET
    if force_path == "resident":
        use_resident = True
    elif force_path == "gather":
        use_resident = False

    if use_resident:
        table_in = embed_table if v_pad == V else jnp.pad(
            embed_table, ((0, v_pad - V), (0, 0)))
        ids_in = ids_i32[..., None]                    # (B, t_pad, 1) column ids
        kernel = functools.partial(_embed_resident_kernel, xscale=xscale)
        x_padded = pl.pallas_call(
            kernel,
            out_shape=jax.ShapeDtypeStruct((B, t_pad, D), out_dtype),
            grid=(B, n_t),
            in_specs=[
                pl.BlockSpec((1, tt, 1), lambda b, j: (b, j, 0)),     # ids tile
                pl.BlockSpec((v_pad, D), lambda b, j: (0, 0)),        # resident table
                pl.BlockSpec((tt, D), lambda b, j: (j, 0)),           # PE tile
            ],
            out_specs=pl.BlockSpec((1, tt, D), lambda b, j: (b, j, 0)),
            compiler_params=pltpu.CompilerParams(
                dimension_semantics=("parallel", "parallel"),
                vmem_limit_bytes=int(max(resident_need, 8 << 20)),
            ),
        )(ids_in, table_in, pe_in)
    else:
        ids_flat = ids_i32.reshape(-1)                 # (B * t_pad,) 1-D SMEM
        kernel = functools.partial(_embed_gather_kernel, xscale=xscale,
                                   tt=tt, n_t=n_t, t_pad=t_pad)
        # TODO(synk): on v7x (2 TCs) this flattened-"arbitrary" grid runs on a
        # single core; a core_map split of the tile range would recover the 2x.
        x_padded = pl.pallas_call(
            kernel,
            out_shape=jax.ShapeDtypeStruct((B, t_pad, D), out_dtype),
            grid_spec=pltpu.PrefetchScalarGridSpec(
                num_scalar_prefetch=1,                 # ids -> SMEM
                grid=(B * n_t,),
                in_specs=[
                    pl.BlockSpec(memory_space=pl.ANY),                   # table in HBM
                    pl.BlockSpec((tt, D), lambda i, ids: (i % n_t, 0)),  # PE tile
                ],
                out_specs=pl.BlockSpec(
                    (1, tt, D), lambda i, ids: (i // n_t, i % n_t, 0)),
                scratch_shapes=[
                    pltpu.VMEM((2, tt, D), out_dtype),   # double-buffered gather
                    pltpu.SemaphoreType.DMA((2,)),
                ],
            ),
            compiler_params=pltpu.CompilerParams(
                dimension_semantics=("arbitrary",),
            ),
        )(ids_flat, embed_table, pe_in)

    x = x_padded[:, :T, :] if t_pad != T else x_padded
    pos_emb = pe[None]                                 # (1, T, D) float32
    # TODO(synk): dropout omitted (identity) -- module behaves as in eval mode.
    return x, pos_emb, x_mask


def _reference(ids, x_mask, embed_table, offset=0):
    """Pure-JAX reference matching the PyTorch forward (eval mode)."""
    T = ids.shape[1]
    D = embed_table.shape[1]
    pe = sinusoidal_position_encoding(T, D, offset)
    emb = jnp.take(embed_table, ids, axis=0)
    x = emb * math.sqrt(D) + pe[None]
    return x, pe[None], x_mask


if __name__ == "__main__":
    B, T = 2, 8          # batch, time
    V, D = 16, 32        # idim (vocab), odim (embedding dim)

    key = jax.random.PRNGKey(0)
    k_ids, k_tab = jax.random.split(key)
    ids = jax.random.randint(k_ids, (B, T), 0, V, dtype=jnp.int32)
    embed_table = jax.random.normal(k_tab, (V, D), dtype=jnp.float32)
    x_mask = jnp.ones((B, 1, T), dtype=jnp.bool_)

    x_ref, pos_ref, _ = _reference(ids, x_mask, embed_table)

    # Fast path (VMEM-resident table + one-hot MXU gather), auto-selected.
    x, pos_emb, mask_out = embedding_no_subsampling(ids, x_mask, embed_table)
    jax.block_until_ready(x)
    jax.block_until_ready(pos_emb)
    assert x.shape == (B, T, D) and pos_emb.shape == (1, T, D)
    assert mask_out.shape == (B, 1, T)
    assert jnp.allclose(x, x_ref, atol=1e-5, rtol=1e-5)
    assert jnp.allclose(pos_emb, pos_ref, atol=1e-5, rtol=1e-5)

    # Large-vocab (HBM DMA-gather) path, forced, validated on the same inputs.
    x_g, _, _ = embedding_no_subsampling(ids, x_mask, embed_table,
                                         force_path="gather")
    jax.block_until_ready(x_g)
    assert jnp.allclose(x_g, x_ref, atol=1e-5, rtol=1e-5)

    # Non-tile-multiple T with a nonzero offset exercises the pad/slice logic.
    T2 = 11
    ids2 = jax.random.randint(jax.random.PRNGKey(1), (B, T2), 0, V, jnp.int32)
    mask2 = jnp.ones((B, 1, T2), dtype=jnp.bool_)
    x2, pos2, _ = embedding_no_subsampling(ids2, mask2, embed_table, offset=3)
    jax.block_until_ready(x2)
    x2_ref, pos2_ref, _ = _reference(ids2, mask2, embed_table, offset=3)
    assert x2.shape == (B, T2, D) and pos2.shape == (1, T2, D)
    assert jnp.allclose(x2, x2_ref, atol=1e-5, rtol=1e-5)
    assert jnp.allclose(pos2, pos2_ref, atol=1e-5, rtol=1e-5)

    print("KERNEL_OK")
</pallas_src>

<mosaic_0001>
module attributes {stable_mosaic.version = 11 : i64} {
  func.func @_embed_resident_kernel(%arg0: i32, %arg1: i32, %arg2: memref<1x8x1xi32, #tpu.memory_space<vmem>>, %arg3: memref<128x32xf32, #tpu.memory_space<vmem>>, %arg4: memref<8x32xf32, #tpu.memory_space<vmem>>, %arg5: memref<1x8x32xf32, #tpu.memory_space<vmem>>) attributes {dimension_semantics = [#tpu.dimension_semantics<parallel>, #tpu.dimension_semantics<parallel>], iteration_bounds = array<i64: 2, 1>, scalar_prefetch = 0 : i64, scratch_operands = 0 : i64, tpu.core_type = #tpu.core_type<tc>, window_params = [{transform_indices = @transform_0, window_bounds = array<i64: 1, 8, 1>}, {pipeline_mode = #tpu.pipeline_mode<synchronous>, transform_indices = @transform_1, window_bounds = array<i64: 128, 32>}, {transform_indices = @transform_2, window_bounds = array<i64: 8, 32>}, {transform_indices = @transform_3, window_bounds = array<i64: 1, 8, 32>}]} {
    %c0 = arith.constant 0 : index
    %c0_0 = arith.constant 0 : index
    %c0_1 = arith.constant 0 : index
    %0 = vector.load %arg2[%c0, %c0_0, %c0_1] : memref<1x8x1xi32, #tpu.memory_space<vmem>>, vector<1x8x1xi32>
    %1 = vector.shape_cast %0 : vector<1x8x1xi32> to vector<8x1xi32>
    %2 = tpu.iota {dimensions = array<i32: 1>} : vector<8x128xi32>
    %3 = vector.broadcast %1 : vector<8x1xi32> to vector<8x128xi32>
    %4 = arith.cmpi eq, %3, %2 : vector<8x128xi32>
    %5 = arith.extui %4 : vector<8x128xi1> to vector<8x128xi32>
    %6 = arith.sitofp %5 : vector<8x128xi32> to vector<8x128xf32>
    %c0_2 = arith.constant 0 : index
    %c0_3 = arith.constant 0 : index
    %7 = vector.load %arg3[%c0_2, %c0_3] : memref<128x32xf32, #tpu.memory_space<vmem>>, vector<128x32xf32>
    %cst = arith.constant dense<0.000000e+00> : vector<8x32xf32>
    %8 = tpu.matmul %6, %7, %cst {dimension_numbers = #tpu.dot_dimension_numbers<[1], [0], [0], [1], [0, 0, 1, 1], [], []>} : vector<8x128xf32>, vector<128x32xf32>, vector<8x32xf32> -> vector<8x32xf32>
    %cst_4 = arith.constant 5.65685415 : f32
    %9 = vector.broadcast %cst_4 : f32 to vector<8x32xf32>
    %10 = arith.mulf %8, %9 : vector<8x32xf32>
    %c0_5 = arith.constant 0 : index
    %c0_6 = arith.constant 0 : index
    %11 = vector.load %arg4[%c0_5, %c0_6] : memref<8x32xf32, #tpu.memory_space<vmem>>, vector<8x32xf32>
    %12 = arith.addf %10, %11 : vector<8x32xf32>
    %c0_7 = arith.constant 0 : index
    %c0_8 = arith.constant 0 : index
    %c0_9 = arith.constant 0 : index
    %13 = vector.load %arg5[%c0_7, %c0_8, %c0_9] : memref<1x8x32xf32, #tpu.memory_space<vmem>>, vector<1x8x32xf32>
    %14 = vector.shape_cast %13 : vector<1x8x32xf32> to vector<8x32xf32>
    %15 = vector.shape_cast %12 : vector<8x32xf32> to vector<1x8x32xf32>
    tpu.vector_store %arg5[%c0_7, %c0_8, %c0_9], %15 {strides = array<i32>} : memref<1x8x32xf32, #tpu.memory_space<vmem>>, vector<1x8x32xf32>,
    return
  }
  func.func @transform_0(%arg0: i32, %arg1: i32) -> (i32, i32, i32) {
    %c0_i32 = arith.constant 0 : i32
    %c0_i32_0 = arith.constant 0 : i32
    return %arg0, %arg1, %c0_i32 : i32, i32, i32
  }
  func.func @transform_1(%arg0: i32, %arg1: i32) -> (i32, i32) {
    %c0_i32 = arith.constant 0 : i32
    %c0_i32_0 = arith.constant 0 : i32
    %c0_i32_1 = arith.constant 0 : i32
    return %c0_i32, %c0_i32_0 : i32, i32
  }
  func.func @transform_2(%arg0: i32, %arg1: i32) -> (i32, i32) {
    %c0_i32 = arith.constant 0 : i32
    %c0_i32_0 = arith.constant 0 : i32
    return %arg1, %c0_i32 : i32, i32
  }
  func.func @transform_3(%arg0: i32, %arg1: i32) -> (i32, i32, i32) {
    %c0_i32 = arith.constant 0 : i32
    %c0_i32_0 = arith.constant 0 : i32
    return %arg0, %arg1, %c0_i32 : i32, i32, i32
  }
}

</mosaic_0001>

<bundles_post_ra>
// kernel: tpu_custom_call.1
= control target key start
LH: loop header
LB: loop body
LE: loop exit
PB: predicated region body
PF: predicated region fallthrough
CT: control target
= control target key end

     0   :  { %8 = vsyncpa [#allocation3], 0  ;;  %s829_s0 = inlined_call_operand.vmem [shape: s32[2,8,1], index: 0, kind: input, shape index: {}]   ;;  %s830_s1 = inlined_call_operand.vmem [shape: f32[128,32], index: 1, kind: input, shape index: {}]   ;;  %s831_s2 = inlined_call_operand.vmem [shape: f32[8,32], index: 2, kind: input, shape index: {}]   ;;  %s832_s3 = inlined_call_operand.hbm [shape: f32[2,8,32], index: 3, kind: output, shape index: {}]  }
   0x1   :  { %10 = vsyncpa [#allocation3 + $0x1], 0  ;;  %s666_s12 = smov 0   ;;  %s668_s13 = smov 0  }
   0x2   :  { %s670_s14 = smov 0   ;;  %s672_s15 = smov 0  }
   0x3   :  { %s674_s16 = smov 0   ;;  %s676_s17 = smov 0  }
   0x4 LB: > { %s409_s18 = sadd.s32 4294967295, %s638_s17   ;;  %s410_s19 = sadd.s32 4294967294, %s638_s17   ;;  %s638_s17 = sphi %s676_s17, %s16_s17   ;;  %s634_s16 = sphi %s674_s16, %s839_s16   ;;  %s630_s15 = sphi %s672_s15, %s838_s15   ;;  %s626_s14 = sphi %s670_s14, %s837_s14   ;;  %s622_s13 = sphi %s668_s13, %s836_s13   ;;  %s618_s12 = sphi %s666_s12, %s835_s12  }
   0x5   : > { %s28_s20 = sadd.s32 1, %s634_s16  ;;  %s112_s21 = sadd.s32 1, %s626_s14 }
   0x6   : > { %p30_p0 = scmp.ge.s32.totalorder %s28_s20, 2  ;;  %p122_p1 = scmp.ne.s32.totalorder %s626_s14, %s622_s13 }
   0x7   : > { %p123_p2 = scmp.eq.s32.totalorder %s409_s18, 1  ;;  %p128_p3 = scmp.ne.s32.totalorder %s622_s13, %s618_s12 }
   0x8   : > { %s841_s20 = smov (%p30_p0, %s28_s20), 0  ;;  %p129_p5 = scmp.eq.s32.totalorder %s410_s19, 1 }
   0x9   : > { %p706_p4 = por %p123_p2, %p122_p1  ;;  %s107_s23 = ssub.s32 %s634_s16, %s841_s20 }
   0xa   : > { %p414_p6 = scmp.ge.s32.totalorder %s638_s17, 1  ;;  %p110_p7 = scmp.eq.s32.totalorder %s107_s23, 0 }
   0xb   : > { %p713_p8 = por %p129_p5, %p128_p3  ;;  %p167_p9 = scmp.lt.s32.totalorder %s638_s17, 3 }
   0xc   : > { %s719_s25 = scalar_select %p110_p7, %s626_s14, %s112_s21  }
   0xd   : > { %p168_p10 = pnand %p414_p6, %p167_p9 }
   0xe   : > { %p197_p11 = scmp.lt.s32.totalorder (!%p168_p10), %s630_s15, 1  ;;  %v217_v0 = vld [vmem:[%s830_s1] sm:$0xff] (!%p168_p10)  ;;  %v218_v1 = vld [vmem:[%s830_s1 + $0x8] sm:$0xff] (!%p168_p10)  ;;  %v219_v2 = vld [vmem:[%s830_s1 + $0x10] sm:$0xff] (!%p168_p10)  ;;  %v640_v3 = vmov (!%p168_p10), 0   ;;  %v641_v4 = vmov (!%p168_p10), 0.0|0.0   ;;  %v209_v28 = vlaneseq (!%p168_p10) }
   0xf   : > { %171 = sbr.rel (%p168_p10) target bundleno = 386 (0x182), region = 32  ;;  %559 = vset.pattern.permute.xlu0 (!%p168_p10), %v640_v3  ;;  %475 = vmatprep.subr.bf16.mxu0 (!%p168_p10), %v641_v4  ;;  %v476_v5 = vpack.c.bf16 (!%p168_p10), %v218_v1, %v217_v0  ;;  %v220_v6 = vld [vmem:[%s830_s1 + $0x18] sm:$0xff] (!%p168_p10)  ;;  %v221_v8 = vld [vmem:[%s830_s1 + $0x20] sm:$0xff] (!%p168_p10)  ;;  %v222_v9 = vld [vmem:[%s830_s1 + $0x28] sm:$0xff] (!%p168_p10)  ;;  %vm642_vm0 = vmmov (!%p168_p10), 0   ;;  %v643_v14 = vmov (!%p168_p10), 0.0  }
  0x10   : > { %v479_v7 = vpack.c.bf16 (!%p168_p10), %v220_v6, %v219_v2  ;;  %v482_v11 = vpack.c.bf16 (!%p168_p10), %v222_v9, %v221_v8  ;;  %v223_v12 = vld [vmem:[%s830_s1 + $0x30] sm:$0xff] (!%p168_p10)  ;;  %v224_v13 = vld [vmem:[%s830_s1 + $0x38] sm:$0xff] (!%p168_p10)  ;;  %472 = vmatprep.mubr.msk.f32.mxu0 (!%p168_p10), %vm642_vm0, %v643_v14  ;;  %v225_v16 = vld [vmem:[%s830_s1 + $0x40] sm:$0xff] (!%p168_p10)  ;;  %v210_v29 = vand.u32 (!%p168_p10), 127, %v209_v28  ;;  %v644_v31 = vmov (!%p168_p10), 1.0   ;;  %s194_s29 = sand.u32 (!%p168_p10), 1, %s622_s13  }
  0x11   : > { %477 = vmatpush3.bf16.msra.mxu0 (!%p168_p10), %v476_v5  ;;  %v485_v15 = vpack.c.bf16 (!%p168_p10), %v224_v13, %v223_v12  ;;  %v226_v17 = vld [vmem:[%s830_s1 + $0x48] sm:$0xff] (!%p168_p10)  ;;  %v227_v19 = vld [vmem:[%s830_s1 + $0x50] sm:$0xff] (!%p168_p10)  ;;  %v228_v20 = vld [vmem:[%s830_s1 + $0x58] sm:$0xff] (!%p168_p10)  ;;  %s415_s30 = sshll.u32 (!%p168_p10), %s194_s29, 3  ;;  %s420_s6 = sshll.u32 (!%p168_p10), %s630_s15, 7  ;;  %vm306_vm2 = vcmask (!%p168_p10), 261120  }
  0x12   : > { %478 = vmatprep.subr.bf16.mxu0 (!%p168_p10), %v641_v4  ;;  %v488_v18 = vpack.c.bf16 (!%p168_p10), %v226_v17, %v225_v16  ;;  %v491_v21 = vpack.c.bf16 (!%p168_p10), %v228_v20, %v227_v19  ;;  %v229_v22 = vld [vmem:[%s830_s1 + $0x60] sm:$0xff] (!%p168_p10)  ;;  %v230_v23 = vld [vmem:[%s830_s1 + $0x68] sm:$0xff] (!%p168_p10)  ;;  %v231_v25 = vld [vmem:[%s830_s1 + $0x70] sm:$0xff] (!%p168_p10)  ;;  %s782_s11 = scalar_lea.hbm (!%p168_p10), %s832_s3, %s420_s6  ;;  %s309_s18 = scalar_lea.sflag (!%p168_p10), [#allocation3], %s194_s29 }
  0x13   : > { %v494_v24 = vpack.c.bf16 (!%p168_p10), %v230_v23, %v229_v22  ;;  %v232_v26 = vld [vmem:[%s830_s1 + $0x78] sm:$0xff] (!%p168_p10)  ;;  %v304_v33 = vld [vmem:[%s831_s2] sm:$0xff] (!%p168_p10) }
  0x14   : > { %v497_v27 = vpack.c.bf16 (!%p168_p10), %v232_v26, %v231_v25 }
  0x15   : > { %480 = vmatpush3.bf16.msra.mxu0 (!%p168_p10), %v479_v7 }
  0x16   : > { %s198_s7 = scalar_select %p197_p11, %s630_s15, 1  ;;  %481 = vmatprep.subr.bf16.mxu0 %v641_v4 }
  0x17   : > { %s645_s15 = smov [#allocation2]  }
  0x18   : > { %s416_s8 = sshll.u32 %s198_s7, 3  ;;  %s196_s7 = scalar_lea.vmem [#allocation2], %s415_s30 }
  0x19   : > { %s203_s23 = scalar_lea.vmem %s829_s0, %s416_s8  ;;  %483 = vmatpush3.bf16.msra.mxu0 %v482_v11  ;;  %s323_s8 = sshll.u32 %s196_s7, 4  ;;  %s784_s8 = int_to_ptr.vmem [resolvable:$true] %s323_s8 }
  0x1a   : > { %v208_v10 = vld [vmem:[%s203_s23] sm:$0xff]  ;;  %484 = vmatprep.subr.bf16.mxu0 %v641_v4  ;;  %s560_s19 = scalar_lea.vmem %s784_s8, 128  ;;  %s564_s21 = sshll.u32 %s645_s15, 4  ;;  %s565_s21 = int_to_ptr.vmem [resolvable:$false] %s564_s21 }
  0x1b   : > { %212 = vperm.xlu0 %559, %v208_v10   ;;  %p561_p12 = scmp.ne.s32.totalorder %s784_s8, %s560_s19  ;;  %s566_s23 = scalar_lea.vmem %s565_s21, 256 }
  0x1c   : > { %p567_p1 = scmp.lt.s32.totalorder %s784_s8, %s565_s21  ;;  %p568_p2 = scmp.lt.s32.totalorder %s566_s23, %s560_s19 }
  0x1d   : > { %486 = vmatpush3.bf16.msra.mxu0 %v485_v15  ;;  %p562_p13 = pnand %p561_p12, %p706_p4 }
  0x1e   : > { %487 = vmatprep.subr.bf16.mxu0 %v641_v4  ;;  %p569_p3 = por %p568_p2, %p567_p1 }
  0x1f   : > { %p563_p0 = pneg %p562_p13 }
  0x21   : > { %489 = vmatpush3.bf16.msra.mxu0 %v488_v18  ;;  %p570_p5 = pnand %p569_p3, %p563_p0 }
  0x22   : > { %490 = vmatprep.subr.bf16.mxu0 %v641_v4 }
  0x25   : > { %492 = vmatpush3.bf16.msra.mxu0 %v491_v21 }
  0x26   : > { %493 = vmatprep.subr.bf16.mxu0 %v641_v4 }
  0x29   : > { %495 = vmatpush3.bf16.msra.mxu0 %v494_v24 }
  0x2a   : > { %496 = vmatprep.subr.bf16.mxu0 %v641_v4 }
  0x2d   : > { %498 = vmatpush3.bf16.msra.mxu0 %v497_v27 }
  0x9a   : > { %v213_v30 = vpop.permute.xlu0 %212 }
  0x9b   : > { %vm214_vm1 = vcmp.eq.s32.totalorder %v213_v30, %v210_v29 }
  0x9c   : > { %473 = vmatmul.mubr.msk.f32.vlgmr.msra.gmra.mrb[0].mxu0 %vm214_vm1, %v644_v31 }
 0x16f   : > { %v299_v32 = vpop.f32.mrb[0].mxu0 }
 0x170   : > { %v303_v34 = vmul.f32 5.656854, %v299_v32  ;;  %v474_v35 = vpop.f32.mrb[1].mxu0 }
 0x172   : > { %v305_v36 = vadd.f32 %v304_v33, %v303_v34 }
 0x174   : > { %307 = vst.msk [vmem:[%s196_s7] sm:$0xff] %vm306_vm2, %v305_v36 }
 0x175   : > { %573 = shalt.err (!%p570_p5)
}
 0x176   : > { %s574_s26 = scalar_lea.hbm %s782_s11, 128  ;;  %s578_s29 = scalar_lea.hbm %s832_s3, 256 }
 0x177   : > { %p575_p6 = scmp.ne.s32.totalorder %s782_s11, %s574_s26  ;;  %p579_p10 = scmp.lt.u32.totalorder %s782_s11, %s832_s3 }
 0x178   : > { %p580_p11 = scmp.lt.u32.totalorder %s578_s29, %s574_s26  ;;  %p582_p13 = scmp.lt.u32.totalorder %s574_s26, %s782_s11 }
 0x179   : > { %p576_p7 = pnand %p575_p6, %p706_p4 }
 0x17a   : > { %p581_p12 = por %p580_p11, %p579_p10 }
 0x17b   : > { %p577_p9 = pneg %p576_p7 }
 0x17c   : > { %p583_p0 = por %p582_p13, %p581_p12 }
 0x17e   : > { %p584_p1 = pnand %p583_p0, %p577_p9 }
 0x180   : > { %587 = shalt.err (!%p584_p1)
}
 0x181   : > { %499 = dma.vmem_to_hbm [thread:$0]  (%p706_p4), %s784_s8, 128, %s782_s11, %s309_s18  }
 0x182 PF: > { %p505_p2 = scmp.ge.s32.totalorder %s638_s17, 2  ;;  %s335_s5 = sand.u32 1, %s618_s12  }
 0x183   : > { %s336_s6 = scalar_lea.sflag [#allocation3], %s335_s5 }
 0x184   : > { %p502_p3 = pnand %p505_p2, %p713_p8 }
 0x186   : > { %613 = dma.done.wait (!%p502_p3), %s336_s6, 128  }
 0x187   : > { %615 = vsyncadd (!%p502_p3), %s336_s6, 4294967168  ;;  %s16_s17 = sadd.s32 1, %s638_s17   ;;  %s835_s12 = smov %s622_s13 }
 0x188   : > { %p13_p5 = scmp.ge.s32.totalorder %s16_s17, 4   ;;  %s836_s13 = smov %s626_s14 }
 0x189   : > { %s837_s14 = smov %s719_s25  ;;  %s838_s15 = smov %s634_s16 }
 0x18a   : > { %s839_s16 = smov %s841_s20  ;;  %15 = sbr.rel (!%p13_p5) target bundleno = 4 (0x4), region = 70 }
 0x191   :  { %341 = vsyncpa [#allocation3], 1 }
 0x192   :  { %343 = vsyncpa [#allocation3 + $0x1], 1 }

</bundles_post_ra>
